<compile_context>
chip_gen: v5e
topology: v5e:2x2
jax: 0.10.0
libtpu: 0.0.40
codegen_flags: <defaults>
</compile_context>

<pallas_src>
import math

import jax
import jax.numpy as jnp
from jax.experimental import pallas as pl
from jax.experimental.pallas import tpu as pltpu


def _round_up(x, m):
    return ((x + m - 1) // m) * m


def _vmem_budget_bytes():
    """(per-block emb budget, vmem_limit_bytes) per TPU generation."""
    try:
        kind = jax.devices()[0].device_kind.lower()
    except Exception:
        kind = ""
    if "v6" in kind or "v5p" in kind:
        # 128 MiB physical VMEM: big double-buffered blocks.
        return 12 * 1024 * 1024, 64 * 1024 * 1024
    if "v5" in kind:
        # v5e: 128 MiB physical, 16 MiB scoped default -> raise explicitly.
        return 8 * 1024 * 1024, 48 * 1024 * 1024
    # v7x (64 MiB physical, 32 MiB scoped) and unknown generations: conservative.
    return 5 * 1024 * 1024, 32 * 1024 * 1024


def _choose_tiles(B, T, H, out_itemsize, emb_budget):
    """Pick (bblk, ttile) for out block (bblk, H, ttile) and input block (bblk, ttile)."""
    # Lane tile: multiple of 128 (or = T when T < 128), footprint-driven.
    if T <= 128:
        ttile = T                               # equals full array dim -> legal
    else:
        ttile = min(1024, _round_up(T, 128))
        while ttile > 128 and H * ttile * out_itemsize > emb_budget:
            ttile -= 128

    # Batch tile: sublane dim of the 2-D inputs -> multiple of 8, or = B when B <= 8.
    if B <= 8:
        bblk = B
    else:
        bblk = 8
        while (bblk * 2 <= _round_up(B, 8)
               and 2 * bblk * H * ttile * out_itemsize <= emb_budget):
            bblk *= 2

    # Megacore (v7x): prefer >= 2 grid blocks along a parallel axis when splittable.
    if pl.cdiv(B, bblk) * pl.cdiv(T, ttile) == 1:
        if T > 128:
            ttile = max(128, _round_up(pl.cdiv(T, 2), 128))
        elif B > 8:
            bblk = max(8, _round_up(pl.cdiv(B, 2), 8))
    return bblk, ttile


def _note_dur_kernel(note_ref, dur_ref, params_ref, emb_ref):
    # note_ref/dur_ref : (bblk, ttile)
    # params_ref       : (H, 3) f32, cols = [wn/sqrt(H), wd/sqrt(H), (bn+bd)/sqrt(H)]
    # emb_ref          : (bblk, H, ttile)  -- already the permuted (B, H, T) layout
    p = params_ref[...]
    wn = p[:, 0][None, :, None]                            # (1, H, 1)
    wd = p[:, 1][None, :, None]
    bs = p[:, 2][None, :, None]
    note = note_ref[...].astype(jnp.float32)[:, None, :]   # (bblk, 1, ttile)
    dur = dur_ref[...].astype(jnp.float32)[:, None, :]
    emb = note * wn + dur * wd + bs                        # f32 math, (bblk, H, ttile)
    emb_ref[...] = emb.astype(emb_ref.dtype)


def _note_only_kernel(note_ref, params_ref, emb_ref):
    # params_ref: (H, 2) f32, cols = [wn/sqrt(H), bn/sqrt(H)]
    p = params_ref[...]
    wn = p[:, 0][None, :, None]
    bs = p[:, 1][None, :, None]
    note = note_ref[...].astype(jnp.float32)[:, None, :]
    emb_ref[...] = (note * wn + bs).astype(emb_ref.dtype)


def note_encoder_pallas(noteID, noteID_lengths, note_dur, wn, bn, wd, bd):
    """Fused NoteEncoder forward. Returns (emb (B, H, T), mask (B, 1, T))."""
    B, T = noteID.shape
    H = wn.shape[0]
    dtype = noteID.dtype
    out_itemsize = jnp.dtype(dtype).itemsize
    inv = 1.0 / math.sqrt(H)

    emb_budget, vmem_limit = _vmem_budget_bytes()
    bblk, ttile = _choose_tiles(B, T, H, out_itemsize, emb_budget)
    grid = (pl.cdiv(B, bblk), pl.cdiv(T, ttile))

    has_dur = note_dur is not None

    # Fold 1/sqrt(H) and biases into a small f32 param block (kept f32: matches
    # PyTorch's f32 Linear math even for low-precision inputs).
    wn_f = wn.reshape(H, 1).astype(jnp.float32) * inv
    bn_f = bn.reshape(H, 1).astype(jnp.float32) * inv
    if has_dur:
        wd_f = wd.reshape(H, 1).astype(jnp.float32) * inv
        bs_f = bn_f + bd.reshape(H, 1).astype(jnp.float32) * inv
        params = jnp.concatenate([wn_f, wd_f, bs_f], axis=1)      # (H, 3) f32
    else:
        params = jnp.concatenate([wn_f, bn_f], axis=1)            # (H, 2) f32

    row_spec = pl.BlockSpec((bblk, ttile), lambda bi, ti: (bi, ti))
    in_arrays = [noteID]
    in_specs = [row_spec]
    if has_dur:
        in_arrays.append(note_dur)
        in_specs.append(pl.BlockSpec((bblk, ttile), lambda bi, ti: (bi, ti)))
    in_arrays.append(params)
    in_specs.append(pl.BlockSpec(params.shape, lambda bi, ti: (0, 0)))

    kernel = _note_dur_kernel if has_dur else _note_only_kernel
    n_streams = 2 if has_dur else 1

    emb = pl.pallas_call(
        kernel,
        grid=grid,
        in_specs=in_specs,
        out_specs=pl.BlockSpec((bblk, H, ttile), lambda bi, ti: (bi, 0, ti)),
        out_shape=jax.ShapeDtypeStruct((B, H, T), dtype),   # unpadded: no slice pass
        compiler_params=pltpu.CompilerParams(
            dimension_semantics=("parallel", "parallel"),
            vmem_limit_bytes=vmem_limit,
        ),
        cost_estimate=pl.CostEstimate(
            flops=(4 if has_dur else 2) * B * H * T,
            transcendentals=0,
            bytes_accessed=(n_streams * B * T + B * H * T) * out_itemsize
                           + params.size * 4,
        ),
    )(*in_arrays)

    # Sequence mask: trivial B*T iota-compare in plain XLA (kept out of the kernel).
    t_idx = jnp.arange(T, dtype=jnp.int32)[None, :]
    mask = (t_idx < noteID_lengths.astype(jnp.int32)[:, None]).astype(dtype)[:, None, :]
    return emb, mask


def note_encoder_ref(noteID, noteID_lengths, note_dur, wn, bn, wd, bd):
    """Pure-JAX reference of the PyTorch forward."""
    B, T = noteID.shape
    H = wn.shape[0]
    inv = 1.0 / math.sqrt(H)
    emb = (noteID[..., None] * wn[:, 0][None, None, :] + bn[:, 0][None, None, :]) * inv
    if note_dur is not None:
        emb = emb + (note_dur[..., None] * wd[:, 0][None, None, :]
                     + bd[:, 0][None, None, :]) * inv
    emb = jnp.transpose(emb, (0, 2, 1))                                        # (B, H, T)
    t_idx = jnp.arange(T)[None, :]
    mask = (t_idx < noteID_lengths[:, None]).astype(noteID.dtype)[:, None, :]  # (B, 1, T)
    return emb, mask


if __name__ == "__main__":
    B, T, H = 2, 8, 32
    key = jax.random.PRNGKey(0)
    k_note, k_dur, k_wn, k_bn, k_wd, k_bd = jax.random.split(key, 6)

    # Inputs (noteID treated as float "pitch id" values, as PyTorch feeds them to Linear).
    noteID = jnp.floor(jax.random.uniform(k_note, (B, T), jnp.float32) * 60.0)
    note_dur = jax.random.uniform(k_dur, (B, T), jnp.float32)
    noteID_lengths = jnp.array([T, T // 2], dtype=jnp.int32)

    # Parameters of nn.Linear(1, H): weight (H, 1), bias stored as (H, 1).
    bound = 1.0  # fan_in = 1 -> U(-1, 1)
    wn = jax.random.uniform(k_wn, (H, 1), jnp.float32, -bound, bound)
    bn = jax.random.uniform(k_bn, (H, 1), jnp.float32, -bound, bound)
    wd = jax.random.uniform(k_wd, (H, 1), jnp.float32, -bound, bound)
    bd = jax.random.uniform(k_bd, (H, 1), jnp.float32, -bound, bound)

    # Path with note_dur provided.
    emb_out, mask_out = note_encoder_pallas(noteID, noteID_lengths, note_dur, wn, bn, wd, bd)
    jax.block_until_ready(emb_out)
    jax.block_until_ready(mask_out)
    emb_exp, mask_exp = note_encoder_ref(noteID, noteID_lengths, note_dur, wn, bn, wd, bd)
    assert emb_out.shape == (B, H, T) and mask_out.shape == (B, 1, T)
    assert jnp.allclose(emb_out, emb_exp, atol=1e-5, rtol=1e-5)
    assert jnp.array_equal(mask_out, mask_exp)

    # Optional note_dur=None path (specialized kernel variant).
    emb_out2, mask_out2 = note_encoder_pallas(noteID, noteID_lengths, None, wn, bn, wd, bd)
    jax.block_until_ready(emb_out2)
    emb_exp2, mask_exp2 = note_encoder_ref(noteID, noteID_lengths, None, wn, bn, wd, bd)
    assert jnp.allclose(emb_out2, emb_exp2, atol=1e-5, rtol=1e-5)
    assert jnp.array_equal(mask_out2, mask_exp2)

    # Ragged-T case exercising the cdiv grid with masked boundary blocks (no pad/slice).
    T2 = 200
    noteID_r = jnp.floor(jax.random.uniform(k_note, (B, T2), jnp.float32) * 60.0)
    note_dur_r = jax.random.uniform(k_dur, (B, T2), jnp.float32)
    lengths_r = jnp.array([T2, 77], dtype=jnp.int32)
    emb_r, mask_r = note_encoder_pallas(noteID_r, lengths_r, note_dur_r, wn, bn, wd, bd)
    jax.block_until_ready(emb_r)
    emb_r_exp, mask_r_exp = note_encoder_ref(noteID_r, lengths_r, note_dur_r, wn, bn, wd, bd)
    assert emb_r.shape == (B, H, T2)
    assert jnp.allclose(emb_r, emb_r_exp, atol=1e-5, rtol=1e-5)
    assert jnp.array_equal(mask_r, mask_r_exp)

    print("KERNEL_OK")
</pallas_src>

<mosaic_0001>
module attributes {stable_mosaic.version = 11 : i64} {
  func.func @_note_dur_kernel(%arg0: i32, %arg1: i32, %arg2: memref<2x8xf32, #tpu.memory_space<vmem>>, %arg3: memref<2x8xf32, #tpu.memory_space<vmem>>, %arg4: memref<32x3xf32, #tpu.memory_space<vmem>>, %arg5: memref<2x32x8xf32, #tpu.memory_space<vmem>>) attributes {dimension_semantics = [#tpu.dimension_semantics<parallel>, #tpu.dimension_semantics<parallel>], iteration_bounds = array<i64: 1, 1>, scalar_prefetch = 0 : i64, scratch_operands = 0 : i64, tpu.core_type = #tpu.core_type<tc>, window_params = [{transform_indices = @transform_0, window_bounds = array<i64: 2, 8>}, {transform_indices = @transform_1, window_bounds = array<i64: 2, 8>}, {pipeline_mode = #tpu.pipeline_mode<synchronous>, transform_indices = @transform_2, window_bounds = array<i64: 32, 3>}, {transform_indices = @transform_3, window_bounds = array<i64: 2, 32, 8>}]} {
    %c0 = arith.constant 0 : index
    %c0_0 = arith.constant 0 : index
    %0 = vector.load %arg4[%c0, %c0_0] : memref<32x3xf32, #tpu.memory_space<vmem>>, vector<32x3xf32>
    %1 = vector.extract_strided_slice %0 {offsets = [0, 0], sizes = [32, 1], strides = [1, 1]} : vector<32x3xf32> to vector<32x1xf32>
    %2 = vector.shape_cast %1 : vector<32x1xf32> to vector<32xf32>
    %3 = vector.shape_cast %2 : vector<32xf32> to vector<1x32x1xf32>
    %4 = vector.extract_strided_slice %0 {offsets = [0, 1], sizes = [32, 1], strides = [1, 1]} : vector<32x3xf32> to vector<32x1xf32>
    %5 = vector.shape_cast %4 : vector<32x1xf32> to vector<32xf32>
    %6 = vector.shape_cast %5 : vector<32xf32> to vector<1x32x1xf32>
    %7 = vector.extract_strided_slice %0 {offsets = [0, 2], sizes = [32, 1], strides = [1, 1]} : vector<32x3xf32> to vector<32x1xf32>
    %8 = vector.shape_cast %7 : vector<32x1xf32> to vector<32xf32>
    %9 = vector.shape_cast %8 : vector<32xf32> to vector<1x32x1xf32>
    %c0_1 = arith.constant 0 : index
    %c0_2 = arith.constant 0 : index
    %10 = vector.load %arg2[%c0_1, %c0_2] : memref<2x8xf32, #tpu.memory_space<vmem>>, vector<2x8xf32>
    %11 = vector.shape_cast %10 : vector<2x8xf32> to vector<2x1x8xf32>
    %c0_3 = arith.constant 0 : index
    %c0_4 = arith.constant 0 : index
    %12 = vector.load %arg3[%c0_3, %c0_4] : memref<2x8xf32, #tpu.memory_space<vmem>>, vector<2x8xf32>
    %13 = vector.shape_cast %12 : vector<2x8xf32> to vector<2x1x8xf32>
    %14 = vector.broadcast %11 : vector<2x1x8xf32> to vector<2x32x8xf32>
    %15 = vector.broadcast %3 : vector<1x32x1xf32> to vector<2x32x8xf32>
    %16 = arith.mulf %14, %15 : vector<2x32x8xf32>
    %17 = vector.broadcast %13 : vector<2x1x8xf32> to vector<2x32x8xf32>
    %18 = vector.broadcast %6 : vector<1x32x1xf32> to vector<2x32x8xf32>
    %19 = arith.mulf %17, %18 : vector<2x32x8xf32>
    %20 = arith.addf %16, %19 : vector<2x32x8xf32>
    %21 = vector.broadcast %9 : vector<1x32x1xf32> to vector<2x32x8xf32>
    %22 = arith.addf %20, %21 : vector<2x32x8xf32>
    %c0_5 = arith.constant 0 : index
    %c0_6 = arith.constant 0 : index
    %c0_7 = arith.constant 0 : index
    %23 = vector.load %arg5[%c0_5, %c0_6, %c0_7] : memref<2x32x8xf32, #tpu.memory_space<vmem>>, vector<2x32x8xf32>
    tpu.vector_store %arg5[%c0_5, %c0_6, %c0_7], %22 {strides = array<i32>} : memref<2x32x8xf32, #tpu.memory_space<vmem>>, vector<2x32x8xf32>,
    return
  }
  func.func @transform_0(%arg0: i32, %arg1: i32) -> (i32, i32) {
    %c0_i32 = arith.constant 0 : i32
    return %arg0, %arg1 : i32, i32
  }
  func.func @transform_1(%arg0: i32, %arg1: i32) -> (i32, i32) {
    %c0_i32 = arith.constant 0 : i32
    return %arg0, %arg1 : i32, i32
  }
  func.func @transform_2(%arg0: i32, %arg1: i32) -> (i32, i32) {
    %c0_i32 = arith.constant 0 : i32
    %c0_i32_0 = arith.constant 0 : i32
    %c0_i32_1 = arith.constant 0 : i32
    return %c0_i32, %c0_i32_0 : i32, i32
  }
  func.func @transform_3(%arg0: i32, %arg1: i32) -> (i32, i32, i32) {
    %c0_i32 = arith.constant 0 : i32
    %c0_i32_0 = arith.constant 0 : i32
    return %arg0, %c0_i32, %arg1 : i32, i32, i32
  }
}

</mosaic_0001>

<bundles_post_ra>
// kernel: tpu_custom_call.1
= control target key start
LH: loop header
LB: loop body
LE: loop exit
PB: predicated region body
PF: predicated region fallthrough
CT: control target
= control target key end

     0   :  { %v140_v0 = vmov 0   ;;  %v141_v3 = vmov 1   ;;  %v142_v6 = vmov 2   ;;  %vm116_vm0 = vcmask 64512   ;;  %s213_s2 = inlined_call_operand.vmem [shape: f32[32,3], index: 2, kind: input, shape index: {}]   ;;  %s214_s1 = inlined_call_operand.vmem [shape: f32[2,8], index: 1, kind: input, shape index: {}]   ;;  %s215_s0 = inlined_call_operand.vmem [shape: f32[2,8], index: 0, kind: input, shape index: {}]   ;;  %s216_s3 = inlined_call_operand.vmem [shape: f32[2,32,8], index: 3, kind: output, shape index: {}]  }
   0x1   :  { %133 = vset.pattern.permute.xlu1 %v140_v0  ;;  %132 = vset.pattern.permute.xlu0 %v140_v0  ;;  %v16_v1 = vld [vmem:[%s213_s2 + $0x10] sm:$0xff]  ;;  %v14_v2 = vld [vmem:[%s213_s2] sm:$0xff]  ;;  %v17_v4 = vld [vmem:[%s213_s2 + $0x18] sm:$0xff] }
   0x2   :  { %40 = vperm.xlu1 %133, %v16_v1   ;;  %30 = vperm.xlu0 %132, %v14_v2   ;;  %v15_v5 = vld [vmem:[%s213_s2 + $0x8] sm:$0xff]  ;;  %v21_v8 = vld [vmem:[%s214_s1] sm:$0x3] }
   0x3   :  { %134 = vset.pattern.permute.xlu2 %v141_v3  ;;  %v18_v9 = vld [vmem:[%s215_s0] sm:$0x3]  ;;  %v23_v10 = vrot.slane %v21_v8, 1  ;;  %v56_v13 = vperm.slane %v21_v8, 0 }
   0x4   :  { %61 = vperm.xlu2 %134, %v14_v2   ;;  %v20_v12 = vrot.slane %v18_v9, 1  ;;  %v24_v15 = vperm.slane %v18_v9, 0 }
   0x5   :  { %v57_v14 = vperm.slane %v23_v10, 0 }
   0x6   :  { %v25_v16 = vperm.slane %v20_v12, 0 }
   0xa   :  { %45 = vperm.xlu1 %133, %v17_v4   ;;  %35 = vperm.xlu0 %132, %v15_v5  }
   0xc   :  { %65 = vperm.xlu2 %134, %v15_v5  }
  0x12   :  { %136 = vset.pattern.permute.xlu1 %v141_v3  ;;  %135 = vset.pattern.permute.xlu0 %v141_v3 }
  0x13   :  { %73 = vperm.xlu1 %136, %v17_v4   ;;  %69 = vperm.xlu0 %135, %v16_v1  }
  0x14   :  { %137 = vset.pattern.permute.xlu2 %v142_v6 }
  0x15   :  { %93 = vperm.xlu2 %137, %v14_v2  }
  0x1b   :  { %138 = vset.pattern.permute.xlu1 %v142_v6  ;;  %139 = vset.pattern.permute.xlu0 %v142_v6 }
  0x1c   :  { %97 = vperm.xlu1 %138, %v15_v5   ;;  %105 = vperm.xlu0 %139, %v17_v4  }
  0x1d   :  { %101 = vperm.xlu2 %137, %v16_v1  }
  0x5e   :  { %v62_v7 = vpop.permute.xlu2 %61 }
  0x5f   :  { %v76_v17 = vmul.f32 %v62_v7, %v56_v13  ;;  %v80_v18 = vmul.f32 %v62_v7, %v57_v14 }
  0x66   :  { %v66_v11 = vpop.permute.xlu2 %65 }
  0x67   :  { %v77_v45 = vmul.f32 %v66_v11, %v56_v13  ;;  %v81_v46 = vmul.f32 %v66_v11, %v57_v14 }
  0x6f   :  { %v94_v23 = vpop.permute.xlu2 %93 }
  0x74   :  { %v41_v19 = vpop.permute.xlu1 %40  ;;  %v31_v20 = vpop.permute.xlu0 %30 }
  0x75   :  { %v48_v21 = vmul.f32 %v31_v20, %v24_v15  ;;  %v52_v22 = vmul.f32 %v31_v20, %v25_v16  ;;  %v50_v32 = vmul.f32 %v41_v19, %v24_v15  ;;  %v54_v33 = vmul.f32 %v41_v19, %v25_v16 }
  0x77   :  { %v84_v24 = vadd.f32 %v76_v17, %v48_v21  ;;  %v88_v25 = vadd.f32 %v80_v18, %v52_v22  ;;  %v102_v41 = vpop.permute.xlu2 %101 }
  0x79   :  { %v108_v26 = vadd.f32 %v94_v23, %v84_v24  ;;  %v112_v27 = vadd.f32 %v94_v23, %v88_v25 }
  0x7b   :  { %117 = vst.msk [vmem:[%s216_s3] sm:$0xff] %vm116_vm0, %v108_v26 }
  0x7c   :  { %121 = vst.msk [vmem:[%s216_s3 + $0x20] sm:$0xff] %vm116_vm0, %v112_v27  ;;  %v46_v28 = vpop.permute.xlu1 %45  ;;  %v36_v29 = vpop.permute.xlu0 %35 }
  0x7d   :  { %v49_v38 = vmul.f32 %v36_v29, %v24_v15  ;;  %v53_v39 = vmul.f32 %v36_v29, %v25_v16  ;;  %v51_v47 = vmul.f32 %v46_v28, %v24_v15  ;;  %v55_v48 = vmul.f32 %v46_v28, %v25_v16 }
  0x7f   :  { %v85_v49 = vadd.f32 %v77_v45, %v49_v38  ;;  %v89_v50 = vadd.f32 %v81_v46, %v53_v39 }
  0x85   :  { %v74_v30 = vpop.permute.xlu1 %73  ;;  %v70_v31 = vpop.permute.xlu0 %69 }
  0x86   :  { %v78_v34 = vmul.f32 %v70_v31, %v56_v13  ;;  %v82_v35 = vmul.f32 %v70_v31, %v57_v14  ;;  %v79_v40 = vmul.f32 %v74_v30, %v56_v13  ;;  %v83_v42 = vmul.f32 %v74_v30, %v57_v14 }
  0x88   :  { %v86_v36 = vadd.f32 %v78_v34, %v50_v32  ;;  %v90_v37 = vadd.f32 %v82_v35, %v54_v33  ;;  %v87_v51 = vadd.f32 %v79_v40, %v51_v47  ;;  %v91_v54 = vadd.f32 %v83_v42, %v55_v48 }
  0x8a   :  { %v110_v43 = vadd.f32 %v102_v41, %v86_v36  ;;  %v114_v44 = vadd.f32 %v102_v41, %v90_v37 }
  0x8c   :  { %119 = vst.msk [vmem:[%s216_s3 + $0x10] sm:$0xff] %vm116_vm0, %v110_v43 }
  0x8d   :  { %123 = vst.msk [vmem:[%s216_s3 + $0x30] sm:$0xff] %vm116_vm0, %v114_v44 }
  0x8e   :  { %v98_v52 = vpop.permute.xlu1 %97  ;;  %v106_v53 = vpop.permute.xlu0 %105 }
  0x8f   :  { %v109_v55 = vadd.f32 %v98_v52, %v85_v49  ;;  %v113_v56 = vadd.f32 %v98_v52, %v89_v50  ;;  %v111_v57 = vadd.f32 %v106_v53, %v87_v51  ;;  %v115_v58 = vadd.f32 %v106_v53, %v91_v54 }
  0x91   :  { %118 = vst.msk [vmem:[%s216_s3 + $0x8] sm:$0xff] %vm116_vm0, %v109_v55 }
  0x92   :  { %122 = vst.msk [vmem:[%s216_s3 + $0x28] sm:$0xff] %vm116_vm0, %v113_v56 }
  0x93   :  { %120 = vst.msk [vmem:[%s216_s3 + $0x18] sm:$0xff] %vm116_vm0, %v111_v57 }
  0x94   :  { %124 = vst.msk [vmem:[%s216_s3 + $0x38] sm:$0xff] %vm116_vm0, %v115_v58 }

</bundles_post_ra>
